<compile_context>
chip_gen: v7x
topology: tpu7x:2x2x1
jax: 0.10.0
libtpu: 0.0.40
codegen_flags: <defaults>
</compile_context>

<pallas_src>
import functools

import jax
import jax.numpy as jnp
import numpy as np
from jax import lax
from jax.experimental import pallas as pl
from jax.experimental.pallas import tpu as pltpu

_LANE = 128
_VMEM_LIMIT = 48 * 1024 * 1024


def _leaky(x, slope=0.2):
    return jnp.where(x >= 0, x, slope * x)


# ----------------------------------------------------------------------------
# Pallas kernel: stride-1 (dilated) Conv1d, NCL layout, lane-dense output.
# K taps folded into one MXU contraction; fused pre-LeakyReLU / bias / post-act.
# ----------------------------------------------------------------------------
def _conv_kernel(x_ref, xh_ref, w_ref, b_ref, o_ref, *,
                 K, dil, tile_l, pre_slope, post):
    # x_ref : (C_in, tile_l)   current tile of the pre-padded input (bf16)
    # xh_ref: (C_in, 128)      right halo (next 128 columns of the same array)
    # w_ref : (C_out, K*C_in)  folded weight, column order k*C_in + ci (bf16)
    # b_ref : (C_out, 1)       f32 bias
    # o_ref : (C_out, tile_l)  lane-dense output tile
    xw = jnp.concatenate([x_ref[...], xh_ref[...]], axis=-1)
    if pre_slope is not None:
        xw = jnp.where(xw >= 0, xw, pre_slope * xw)
    if K == 1:
        cols = xw[:, :tile_l]
    else:
        cols = jnp.concatenate(
            [xw[:, k * dil:k * dil + tile_l] for k in range(K)], axis=0)
    acc = jnp.dot(w_ref[...], cols, preferred_element_type=jnp.float32)
    acc = acc + b_ref[...]
    if post == "leaky":
        acc = jnp.where(acc >= 0, acc, 0.2 * acc)
    elif post == "tanh":
        acc = jnp.tanh(acc)
    o_ref[...] = acc.astype(o_ref.dtype)


# ----------------------------------------------------------------------------
# Pallas kernel: fused ResnetBlock
#   out = Conv1x1(x) + Conv1x1( leaky( Conv3_dilated( leaky(x) ) ) )
# ----------------------------------------------------------------------------
def _resblock_kernel(x_ref, xh_ref, w3_ref, b3_ref, w1_ref, b1_ref,
                     ws_ref, bs_ref, o_ref, *, dil, tile_l, slope):
    xw = jnp.concatenate([x_ref[...], xh_ref[...]], axis=-1)   # reflect-padded x
    xa = jnp.where(xw >= 0, xw, slope * xw)
    cols = jnp.concatenate(
        [xa[:, k * dil:k * dil + tile_l] for k in range(3)], axis=0)
    h = jnp.dot(w3_ref[...], cols, preferred_element_type=jnp.float32)
    h = h + b3_ref[...]
    h = jnp.where(h >= 0, h, slope * h).astype(jnp.bfloat16)
    h2 = jnp.dot(w1_ref[...], h, preferred_element_type=jnp.float32) + b1_ref[...]
    xc = xw[:, dil:dil + tile_l]                               # raw x (no leaky)
    sc = jnp.dot(ws_ref[...], xc, preferred_element_type=jnp.float32) + bs_ref[...]
    o_ref[...] = (h2 + sc).astype(o_ref.dtype)


# ----------------------------------------------------------------------------
# Wrappers
# ----------------------------------------------------------------------------
def conv1d_pallas(x, w2, bias, *, K, dil=1, pad=0, pad_mode="constant",
                  pre_slope=None, post=None, out_dtype=jnp.bfloat16,
                  tile_l_max=512):
    """Stride-1 (dilated) Conv1d.  x: (B, C_in, L) NCL; w2: (C_out, K*C_in)."""
    B, C_in, L = x.shape
    C_out = w2.shape[0]
    halo = (K - 1) * dil
    assert halo <= _LANE, "filter footprint must fit in one 128-lane halo block"
    L_out = L + 2 * pad - halo
    assert L_out >= 1

    # Pad output channels up to a multiple of 8 sublanes (hits only the final
    # 1-channel conv); extra rows are zero-weight/zero-bias and sliced off.
    C_out_k = max(8, -(-C_out // 8) * 8)
    if C_out_k != C_out:
        w2 = jnp.pad(w2, ((0, C_out_k - C_out), (0, 0)))
        bias = jnp.pad(bias, (0, C_out_k - C_out))

    tile_l = min(tile_l_max, _LANE * pl.cdiv(L_out, _LANE))
    assert tile_l % _LANE == 0
    n_tiles = pl.cdiv(L_out, tile_l)
    L_tot = n_tiles * tile_l + _LANE          # room for the right halo block

    # TODO(synk): fold conv padding into the kernel's halo read instead of
    # materializing a padded copy of the activation per layer.
    if pad > 0:
        x = jnp.pad(x, ((0, 0), (0, 0), (pad, pad)), mode=pad_mode)
    x = jnp.pad(x, ((0, 0), (0, 0), (0, L_tot - x.shape[2])))
    x = x.astype(jnp.bfloat16)
    w2 = w2.astype(jnp.bfloat16)
    bcol = bias.reshape(C_out_k, 1).astype(jnp.float32)

    kernel = functools.partial(_conv_kernel, K=K, dil=dil, tile_l=tile_l,
                               pre_slope=pre_slope, post=post)
    flops = 2 * B * n_tiles * tile_l * C_out_k * K * C_in
    bytes_acc = 2 * (x.size + w2.size + B * C_out_k * n_tiles * tile_l)
    trans = B * C_out_k * n_tiles * tile_l if post == "tanh" else 0

    out = pl.pallas_call(
        kernel,
        grid=(B, n_tiles),
        in_specs=[
            pl.BlockSpec((None, C_in, tile_l), lambda b, t: (b, 0, t)),
            pl.BlockSpec((None, C_in, _LANE),
                         lambda b, t: (b, 0, (t + 1) * (tile_l // _LANE))),
            pl.BlockSpec((C_out_k, K * C_in), lambda b, t: (0, 0)),
            pl.BlockSpec((C_out_k, 1), lambda b, t: (0, 0)),
        ],
        out_specs=pl.BlockSpec((None, C_out_k, tile_l), lambda b, t: (b, 0, t)),
        out_shape=jax.ShapeDtypeStruct((B, C_out_k, n_tiles * tile_l), out_dtype),
        compiler_params=pltpu.CompilerParams(
            dimension_semantics=("parallel", "parallel"),
            vmem_limit_bytes=_VMEM_LIMIT),
        cost_estimate=pl.CostEstimate(flops=flops, transcendentals=trans,
                                      bytes_accessed=bytes_acc),
    )(x, x, w2, bcol)
    return out[:, :C_out, :L_out]


def conv_transpose1d_pallas(x, w, bias, *, stride, padding, pre_slope=0.2,
                            out_dtype=jnp.bfloat16, tile_l_max=512):
    """ConvTranspose1d (k=2*stride, output_padding=stride%2), fused LeakyReLU
    on the input.  Lowered to a polyphase stride-1 K=3 conv that produces
    stride*C_out channels per input step, then interleaved (depth-to-length)."""
    B, C_in, L = x.shape
    C_in_w, C_out, K = w.shape           # PyTorch ConvTranspose1d layout
    s, p = stride, padding
    assert C_in_w == C_in and K == 2 * s and 0 <= p < s

    u = np.arange(s)
    center = w[:, :, u + p]                                        # tap x[n]
    left = jnp.where((u + p < s)[None, None, :],
                     w[:, :, (u + p + s) % K], 0.0)                # tap x[n-1]
    right = jnp.where((u + p >= s)[None, None, :],
                      w[:, :, (u + p - s) % K], 0.0)               # tap x[n+1]
    w_eff = jnp.stack([left, center, right], axis=0)               # (3,Ci,Co,s)
    w2 = jnp.transpose(w_eff, (2, 3, 0, 1)).reshape(C_out * s, 3 * C_in)
    b_eff = jnp.repeat(bias, s)                                    # row co*s+u

    y = conv1d_pallas(x, w2, b_eff, K=3, dil=1, pad=1, pad_mode="constant",
                      pre_slope=pre_slope, post=None, out_dtype=out_dtype,
                      tile_l_max=tile_l_max)                       # (B, s*Co, L)
    # TODO(synk): interleave the phases inside the kernel (strided lane stores)
    # instead of this XLA reshape/transpose round trip.
    return y.reshape(B, C_out, s, L).transpose(0, 1, 3, 2).reshape(B, C_out, s * L)


def resblock_pallas(x, rb, *, tile_l_max=512, slope=0.2, out_dtype=jnp.bfloat16):
    """Fused ResnetBlock: shortcut(x) + block(x)."""
    B, C, L = x.shape
    d = rb["dil"]
    assert 2 * d <= _LANE
    tile_l = min(tile_l_max, _LANE * pl.cdiv(L, _LANE))
    n_tiles = pl.cdiv(L, tile_l)
    L_tot = n_tiles * tile_l + _LANE

    xp = jnp.pad(x, ((0, 0), (0, 0), (d, d)), mode="reflect")
    xp = jnp.pad(xp, ((0, 0), (0, 0), (0, L_tot - xp.shape[2])))
    xp = xp.astype(jnp.bfloat16)
    w3 = rb["c3"]["w2"].astype(jnp.bfloat16)   # (C, 3C)
    w1 = rb["c1"]["w2"].astype(jnp.bfloat16)   # (C, C)
    ws = rb["sc"]["w2"].astype(jnp.bfloat16)   # (C, C)
    b3 = rb["c3"]["b"].reshape(C, 1).astype(jnp.float32)
    b1 = rb["c1"]["b"].reshape(C, 1).astype(jnp.float32)
    bs = rb["sc"]["b"].reshape(C, 1).astype(jnp.float32)

    kernel = functools.partial(_resblock_kernel, dil=d, tile_l=tile_l, slope=slope)
    flops = 2 * B * n_tiles * tile_l * C * (3 * C + 2 * C)
    bytes_acc = 2 * (xp.size + w3.size + w1.size + ws.size
                     + B * C * n_tiles * tile_l)

    out = pl.pallas_call(
        kernel,
        grid=(B, n_tiles),
        in_specs=[
            pl.BlockSpec((None, C, tile_l), lambda b, t: (b, 0, t)),
            pl.BlockSpec((None, C, _LANE),
                         lambda b, t: (b, 0, (t + 1) * (tile_l // _LANE))),
            pl.BlockSpec((C, 3 * C), lambda b, t: (0, 0)),
            pl.BlockSpec((C, 1), lambda b, t: (0, 0)),
            pl.BlockSpec((C, C), lambda b, t: (0, 0)),
            pl.BlockSpec((C, 1), lambda b, t: (0, 0)),
            pl.BlockSpec((C, C), lambda b, t: (0, 0)),
            pl.BlockSpec((C, 1), lambda b, t: (0, 0)),
        ],
        out_specs=pl.BlockSpec((None, C, tile_l), lambda b, t: (b, 0, t)),
        out_shape=jax.ShapeDtypeStruct((B, C, n_tiles * tile_l), out_dtype),
        compiler_params=pltpu.CompilerParams(
            dimension_semantics=("parallel", "parallel"),
            vmem_limit_bytes=_VMEM_LIMIT),
        cost_estimate=pl.CostEstimate(flops=flops, transcendentals=0,
                                      bytes_accessed=bytes_acc),
    )(xp, xp, w3, b3, w1, b1, ws, bs)
    return out[:, :, :L]


# ----------------------------------------------------------------------------
# Parameter setup (weight_norm: w = g * v / ||v||_dim0) -- plain JAX glue
# ----------------------------------------------------------------------------
def _weight_norm(v, g):
    return g * v * lax.rsqrt(jnp.sum(v * v, axis=(1, 2), keepdims=True))


def init_conv(key, c_in, c_out, K):
    kv, kg, kb = jax.random.split(key, 3)
    v = 0.02 * jax.random.normal(kv, (c_out, c_in, K), jnp.float32)
    g = jax.random.uniform(kg, (c_out, 1, 1), jnp.float32, 0.5, 1.5)
    w = _weight_norm(v, g)                                   # (C_out, C_in, K)
    b = 0.01 * jax.random.normal(kb, (c_out,), jnp.float32)
    w2 = jnp.transpose(w, (0, 2, 1)).reshape(c_out, K * c_in)  # (C_out, K*C_in)
    return dict(w=w, b=b, w2=w2)


def init_convT(key, c_in, c_out, K):
    kv, kg, kb = jax.random.split(key, 3)
    v = 0.02 * jax.random.normal(kv, (c_in, c_out, K), jnp.float32)
    g = jax.random.uniform(kg, (c_in, 1, 1), jnp.float32, 0.5, 1.5)
    w = _weight_norm(v, g)                                   # torch CT layout
    b = 0.01 * jax.random.normal(kb, (c_out,), jnp.float32)
    return dict(w=w, b=b)


def build_params(key, input_size, ngf, n_residual_layers):
    ratios = [8, 8, 2, 2]
    mult = int(2 ** len(ratios))
    params = {}
    key, k = jax.random.split(key)
    params["conv_in"] = init_conv(k, input_size, mult * ngf, 7)
    stages = []
    for r in ratios:
        c_out = mult * ngf // 2
        key, k = jax.random.split(key)
        st = dict(r=r, p=r // 2 + r % 2,
                  ct=init_convT(k, mult * ngf, c_out, 2 * r), res=[])
        for j in range(n_residual_layers):
            key, k1 = jax.random.split(key)
            ka, kb_, kc = jax.random.split(k1, 3)
            st["res"].append(dict(dil=3 ** j,
                                  c3=init_conv(ka, c_out, c_out, 3),
                                  c1=init_conv(kb_, c_out, c_out, 1),
                                  sc=init_conv(kc, c_out, c_out, 1)))
        stages.append(st)
        mult //= 2
    params["stages"] = stages
    key, k = jax.random.split(key)
    params["conv_out"] = init_conv(k, ngf, 1, 7)
    return params


# ----------------------------------------------------------------------------
# Forward pass (Pallas)
# ----------------------------------------------------------------------------
def generator_forward(x, params):
    p0 = params["conv_in"]
    h = conv1d_pallas(x, p0["w2"], p0["b"], K=7, pad=3, pad_mode="reflect")
    for st in params["stages"]:
        h = conv_transpose1d_pallas(h, st["ct"]["w"], st["ct"]["b"],
                                    stride=st["r"], padding=st["p"])
        for rb in st["res"]:
            h = resblock_pallas(h, rb)
    pf = params["conv_out"]
    return conv1d_pallas(h, pf["w2"], pf["b"], K=7, pad=3, pad_mode="reflect",
                         pre_slope=0.2, post="tanh", out_dtype=jnp.float32)


# ----------------------------------------------------------------------------
# Pure-JAX reference (same bf16-activation / f32-accumulation policy)
# ----------------------------------------------------------------------------
def ref_conv(x, w, b, *, pad=0, pad_mode="constant", dil=1, pre=False, post=None):
    xb = x.astype(jnp.bfloat16)
    if pre:
        xb = _leaky(xb)
    if pad > 0:
        xb = jnp.pad(xb, ((0, 0), (0, 0), (pad, pad)), mode=pad_mode)
    y = lax.conv_general_dilated(
        xb, w.astype(jnp.bfloat16), window_strides=(1,), padding=[(0, 0)],
        rhs_dilation=(dil,), dimension_numbers=("NCH", "OIH", "NCH"),
        preferred_element_type=jnp.float32)
    y = y + b.reshape(1, -1, 1)
    if post == "tanh":
        y = jnp.tanh(y)
    return y


def ref_conv_transpose(x, w, b, *, stride, padding):
    xb = _leaky(x.astype(jnp.bfloat16))
    C_in, C_out, K = w.shape
    s, p = stride, padding
    op = s % 2
    w_flip = jnp.flip(w, axis=2).transpose(1, 0, 2)      # (C_out, C_in, K)
    y = lax.conv_general_dilated(
        xb, w_flip.astype(jnp.bfloat16), window_strides=(1,),
        padding=[(K - 1 - p, K - 1 - p + op)], lhs_dilation=(s,),
        dimension_numbers=("NCH", "OIH", "NCH"),
        preferred_element_type=jnp.float32)
    return y + b.reshape(1, -1, 1)


def ref_resblock(x, rb):
    d = rb["dil"]
    xb = x.astype(jnp.bfloat16)
    h = ref_conv(_leaky(xb), rb["c3"]["w"], rb["c3"]["b"],
                 pad=d, pad_mode="reflect", dil=d)
    h = _leaky(h).astype(jnp.bfloat16)
    h2 = ref_conv(h, rb["c1"]["w"], rb["c1"]["b"])
    sc = ref_conv(xb, rb["sc"]["w"], rb["sc"]["b"])
    return (h2 + sc).astype(jnp.bfloat16)


def ref_forward(x, params):
    h = ref_conv(x, params["conv_in"]["w"], params["conv_in"]["b"],
                 pad=3, pad_mode="reflect").astype(jnp.bfloat16)
    for st in params["stages"]:
        h = ref_conv_transpose(h, st["ct"]["w"], st["ct"]["b"],
                               stride=st["r"], padding=st["p"]).astype(jnp.bfloat16)
        for rb in st["res"]:
            h = ref_resblock(h, rb)
    return ref_conv(h, params["conv_out"]["w"], params["conv_out"]["b"],
                    pad=3, pad_mode="reflect", pre=True, post="tanh")


if __name__ == "__main__":
    # Small but structurally complete config: ratios [8,8,2,2] -> 256x upsample.
    input_size, ngf, n_residual_layers = 32, 16, 2
    B, L_mel = 2, 8
    hop = 8 * 8 * 2 * 2

    key = jax.random.PRNGKey(0)
    kx, kp = jax.random.split(key)
    x = jax.random.normal(kx, (B, input_size, L_mel), jnp.float32)   # (B, C, L) NCL
    params = build_params(kp, input_size, ngf, n_residual_layers)

    y = generator_forward(x, params)
    y = jax.block_until_ready(y)
    assert y.shape == (B, 1, hop * L_mel), y.shape

    y_ref = jax.block_until_ready(ref_forward(x, params))
    np.testing.assert_allclose(np.asarray(y), np.asarray(y_ref),
                               rtol=2e-2, atol=2e-2)
    print("KERNEL_OK")
</pallas_src>

<mosaic_0001>
module attributes {stable_mosaic.version = 11 : i64} {
  func.func @_conv_kernel(%arg0: i32, %arg1: i32, %arg2: memref<1x32x128xbf16, #tpu.memory_space<vmem>>, %arg3: memref<1x32x128xbf16, #tpu.memory_space<vmem>>, %arg4: memref<256x224xbf16, #tpu.memory_space<vmem>>, %arg5: memref<256x1xf32, #tpu.memory_space<vmem>>, %arg6: memref<1x256x128xbf16, #tpu.memory_space<vmem>>) attributes {dimension_semantics = [#tpu.dimension_semantics<parallel>, #tpu.dimension_semantics<parallel>], iteration_bounds = array<i64: 2, 1>, scalar_prefetch = 0 : i64, scratch_operands = 0 : i64, tpu.core_type = #tpu.core_type<tc>, window_params = [{transform_indices = @transform_0, window_bounds = array<i64: 1, 32, 128>}, {transform_indices = @transform_1, window_bounds = array<i64: 1, 32, 128>}, {pipeline_mode = #tpu.pipeline_mode<synchronous>, transform_indices = @transform_2, window_bounds = array<i64: 256, 224>}, {pipeline_mode = #tpu.pipeline_mode<synchronous>, transform_indices = @transform_3, window_bounds = array<i64: 256, 1>}, {transform_indices = @transform_4, window_bounds = array<i64: 1, 256, 128>}]} {
    %c0 = arith.constant 0 : index
    %c0_0 = arith.constant 0 : index
    %c0_1 = arith.constant 0 : index
    %0 = vector.load %arg2[%c0, %c0_0, %c0_1] : memref<1x32x128xbf16, #tpu.memory_space<vmem>>, vector<1x32x128xbf16>
    %1 = vector.shape_cast %0 : vector<1x32x128xbf16> to vector<32x128xbf16>
    %c0_2 = arith.constant 0 : index
    %c0_3 = arith.constant 0 : index
    %c0_4 = arith.constant 0 : index
    %2 = vector.load %arg3[%c0_2, %c0_3, %c0_4] : memref<1x32x128xbf16, #tpu.memory_space<vmem>>, vector<1x32x128xbf16>
    %3 = vector.shape_cast %2 : vector<1x32x128xbf16> to vector<32x128xbf16>
    %4 = tpu.concatenate %1, %3 in 1 : vector<32x128xbf16>, vector<32x128xbf16> -> vector<32x256xbf16>
    %5 = vector.extract_strided_slice %4 {offsets = [0, 0], sizes = [32, 128], strides = [1, 1]} : vector<32x256xbf16> to vector<32x128xbf16>
    %6 = vector.extract_strided_slice %4 {offsets = [0, 1], sizes = [32, 128], strides = [1, 1]} : vector<32x256xbf16> to vector<32x128xbf16>
    %7 = vector.extract_strided_slice %4 {offsets = [0, 2], sizes = [32, 128], strides = [1, 1]} : vector<32x256xbf16> to vector<32x128xbf16>
    %8 = vector.extract_strided_slice %4 {offsets = [0, 3], sizes = [32, 128], strides = [1, 1]} : vector<32x256xbf16> to vector<32x128xbf16>
    %9 = vector.extract_strided_slice %4 {offsets = [0, 4], sizes = [32, 128], strides = [1, 1]} : vector<32x256xbf16> to vector<32x128xbf16>
    %10 = vector.extract_strided_slice %4 {offsets = [0, 5], sizes = [32, 128], strides = [1, 1]} : vector<32x256xbf16> to vector<32x128xbf16>
    %11 = vector.extract_strided_slice %4 {offsets = [0, 6], sizes = [32, 128], strides = [1, 1]} : vector<32x256xbf16> to vector<32x128xbf16>
    %12 = tpu.concatenate %5, %6, %7, %8, %9, %10, %11 in 0 : vector<32x128xbf16>, vector<32x128xbf16>, vector<32x128xbf16>, vector<32x128xbf16>, vector<32x128xbf16>, vector<32x128xbf16>, vector<32x128xbf16> -> vector<224x128xbf16>
    %c0_5 = arith.constant 0 : index
    %c0_6 = arith.constant 0 : index
    %13 = vector.load %arg4[%c0_5, %c0_6] : memref<256x224xbf16, #tpu.memory_space<vmem>>, vector<256x224xbf16>
    %cst = arith.constant dense<0.000000e+00> : vector<256x128xf32>
    %14 = tpu.matmul %13, %12, %cst {dimension_numbers = #tpu.dot_dimension_numbers<[1], [0], [0], [1], [0, 0, 1, 1], [], []>} : vector<256x224xbf16>, vector<224x128xbf16>, vector<256x128xf32> -> vector<256x128xf32>
    %c0_7 = arith.constant 0 : index
    %c0_8 = arith.constant 0 : index
    %15 = vector.load %arg5[%c0_7, %c0_8] : memref<256x1xf32, #tpu.memory_space<vmem>>, vector<256x1xf32>
    %16 = vector.broadcast %15 : vector<256x1xf32> to vector<256x128xf32>
    %17 = arith.addf %14, %16 : vector<256x128xf32>
    %18 = arith.truncf %17 : vector<256x128xf32> to vector<256x128xbf16>
    %c0_9 = arith.constant 0 : index
    %c0_10 = arith.constant 0 : index
    %c0_11 = arith.constant 0 : index
    %19 = vector.load %arg6[%c0_9, %c0_10, %c0_11] : memref<1x256x128xbf16, #tpu.memory_space<vmem>>, vector<1x256x128xbf16>
    %20 = vector.shape_cast %19 : vector<1x256x128xbf16> to vector<256x128xbf16>
    %21 = vector.shape_cast %18 : vector<256x128xbf16> to vector<1x256x128xbf16>
    tpu.vector_store %arg6[%c0_9, %c0_10, %c0_11], %21 {strides = array<i32>} : memref<1x256x128xbf16, #tpu.memory_space<vmem>>, vector<1x256x128xbf16>,
    return
  }
  func.func @transform_0(%arg0: i32, %arg1: i32) -> (i32, i32, i32) {
    %c0_i32 = arith.constant 0 : i32
    %c0_i32_0 = arith.constant 0 : i32
    return %arg0, %c0_i32, %arg1 : i32, i32, i32
  }
  func.func @transform_1(%arg0: i32, %arg1: i32) -> (i32, i32, i32) {
    %c1_i32 = arith.constant 1 : i32
    %0 = arith.addi %arg1, %c1_i32 : i32
    %c1_i32_0 = arith.constant 1 : i32
    %1 = arith.muli %0, %c1_i32_0 : i32
    %c0_i32 = arith.constant 0 : i32
    %c0_i32_1 = arith.constant 0 : i32
    return %arg0, %c0_i32, %1 : i32, i32, i32
  }
  func.func @transform_2(%arg0: i32, %arg1: i32) -> (i32, i32) {
    %c0_i32 = arith.constant 0 : i32
    %c0_i32_0 = arith.constant 0 : i32
    %c0_i32_1 = arith.constant 0 : i32
    return %c0_i32, %c0_i32_0 : i32, i32
  }
  func.func @transform_3(%arg0: i32, %arg1: i32) -> (i32, i32) {
    %c0_i32 = arith.constant 0 : i32
    %c0_i32_0 = arith.constant 0 : i32
    %c0_i32_1 = arith.constant 0 : i32
    return %c0_i32, %c0_i32_0 : i32, i32
  }
  func.func @transform_4(%arg0: i32, %arg1: i32) -> (i32, i32, i32) {
    %c0_i32 = arith.constant 0 : i32
    %c0_i32_0 = arith.constant 0 : i32
    return %arg0, %c0_i32, %arg1 : i32, i32, i32
  }
}

</mosaic_0001>

<bundles_post_ra>
// kernel: tpu_custom_call.1
= control target key start
LH: loop header
LB: loop body
LE: loop exit
PB: predicated region body
PF: predicated region fallthrough
CT: control target
= control target key end

     0   :  { %9 = vsyncpa [#allocation5], 0  ;;  %s2235_s0 = inlined_call_operand.vmem [shape: bf16[2,32,256], index: 0, kind: input, shape index: {}]   ;;  %s2236_s1 = inlined_call_operand.vmem [shape: bf16[2,32,256], index: 1, kind: input, shape index: {}]   ;;  %s2237_s2 = inlined_call_operand.vmem [shape: bf16[256,224], index: 2, kind: input, shape index: {}]   ;;  %s2238_s3 = inlined_call_operand.vmem [shape: f32[256,1], index: 3, kind: input, shape index: {}]   ;;  %s2239_s4 = inlined_call_operand.hbm [shape: bf16[2,256,128], index: 4, kind: output, shape index: {}]  }
   0x1   :  { %11 = vsyncpa [#allocation5 + $0x1], 0  ;;  %s1809_s15 = smov 0   ;;  %s1811_s16 = smov 0  }
   0x2   :  { %s1813_s17 = smov 0   ;;  %s1815_s18 = smov 0  }
   0x3   :  { %s1817_s19 = smov 0   ;;  %s1819_s20 = smov 0  }
   0x4 LB: > { %s1311_s21 = sadd.s32 4294967295, %s1772_s20   ;;  %s1312_s22 = sadd.s32 4294967294, %s1772_s20   ;;  %s1772_s20 = sphi %s1819_s20, %s17_s20   ;;  %s1768_s19 = sphi %s1817_s19, %s2247_s19   ;;  %s1764_s18 = sphi %s1815_s18, %s2246_s18   ;;  %s1760_s17 = sphi %s1813_s17, %s2245_s17   ;;  %s1756_s16 = sphi %s1811_s16, %s2244_s16   ;;  %s1752_s15 = sphi %s1809_s15, %s2243_s15  }
   0x5   : > { %s29_s23 = sadd.s32 1, %s1768_s19  ;;  %s38_s24 = sadd.s32 1, %s1760_s17 }
   0x6   : > { %p31_p0 = scmp.ge.s32.totalorder %s29_s23, 2  ;;  %p45_p1 = scmp.ne.s32.totalorder %s1760_s17, %s1756_s16 }
   0x7   : > { %p46_p2 = scmp.eq.s32.totalorder %s1772_s20, 0  ;;  %p149_p3 = scmp.eq.s32.totalorder %s1311_s21, 1 }
   0x8   : > { %s2249_s23 = smov (%p31_p0, %s29_s23), 0  ;;  %p154_p6 = scmp.ne.s32.totalorder %s1756_s16, %s1752_s15 }
   0x9   : > { %p1848_p4 = por %p46_p2, %p45_p1  ;;  %p1852_p5 = por %p149_p3, %p45_p1 }
   0xa   : > { %s33_s27 = ssub.s32 %s1768_s19, %s2249_s23  ;;  %p155_p8 = scmp.eq.s32.totalorder %s1312_s22, 1 }
   0xb   : > { %p36_p7 = scmp.eq.s32.totalorder %s33_s27, 0  ;;  %p1314_p10 = scmp.ge.s32.totalorder %s1772_s20, 2 }
   0xc   : > { %p1863_p9 = por %p155_p8, %p154_p6 }
   0xd   : > { %s1861_s28 = scalar_select %p36_p7, %s1760_s17, %s38_s24  }
   0xe   : > { %177 = sbr.rel (%p1314_p10) target bundleno = 35 (0x23), region = 24 }
  0x15   : > { %180 = sbr.rel (!%p1848_p4) target bundleno = 28 (0x1c), region = 28  ;;  %s182_s30 = sand.u32 (%p1848_p4), 1, %s1760_s17  }
  0x16   : > { %s1418_s5 = sshll.u32 (%p1848_p4), %s1768_s19, 5  ;;  %s1315_s6 = sshll.u32 (%p1848_p4), %s182_s30, 4 }
  0x17   : > { %s188_s9 = scalar_lea.vmem (%p1848_p4), %s2235_s0, %s1418_s5  ;;  %s184_s10 = scalar_lea.vmem (%p1848_p4), [#allocation2], %s1315_s6 }
  0x18   : > { %v204_v0 = vld [vmem:[%s188_s9] sm:$0xf] (%p1848_p4)  ;;  %v206_v1 = vld [vmem:[%s188_s9 + $0x8] sm:$0xf] (%p1848_p4)  ;;  %v208_v2 = vld [vmem:[%s188_s9 + $0x10] sm:$0xf] (%p1848_p4) }
  0x19   : > { %205 = vst [vmem:[%s184_s10] sm:$0xf] (%p1848_p4), %v204_v0  ;;  %207 = vst [vmem:[%s184_s10 + $0x4] sm:$0xf] (%p1848_p4), %v206_v1  ;;  %v210_v3 = vld [vmem:[%s188_s9 + $0x18] sm:$0xf] (%p1848_p4) }
  0x1a   : > { %209 = vst [vmem:[%s184_s10 + $0x8] sm:$0xf] (%p1848_p4), %v208_v2  ;;  %211 = vst [vmem:[%s184_s10 + $0xc] sm:$0xf] (%p1848_p4), %v210_v3 }
  0x1c PF: > { %242 = sbr.rel (!%p1848_p4) target bundleno = 35 (0x23), region = 69  ;;  %s244_s11 = sand.u32 (%p1848_p4), 1, %s1760_s17  }
  0x1d   : > { %s1419_s12 = sshll.u32 (%p1848_p4), %s1768_s19, 5  ;;  %s1318_s13 = sshll.u32 (%p1848_p4), %s244_s11, 4 }
  0x1e   : > { %s1245_s22 = scalar_lea.vmem (%p1848_p4), %s2236_s1, %s1419_s12  ;;  %s246_s24 = scalar_lea.vmem (%p1848_p4), [#allocation3], %s1318_s13 }
  0x1f   : > { %v1321_v4 = vld [vmem:[%s1245_s22 + $0x4] sm:$0xf] (%p1848_p4)  ;;  %v1322_v5 = vld [vmem:[%s1245_s22 + $0xc] sm:$0xf] (%p1848_p4)  ;;  %v1323_v6 = vld [vmem:[%s1245_s22 + $0x14] sm:$0xf] (%p1848_p4) }
  0x20   : > { %268 = vst [vmem:[%s246_s24] sm:$0xf] (%p1848_p4), %v1321_v4  ;;  %270 = vst [vmem:[%s246_s24 + $0x4] sm:$0xf] (%p1848_p4), %v1322_v5  ;;  %v1324_v7 = vld [vmem:[%s1245_s22 + $0x1c] sm:$0xf] (%p1848_p4) }
  0x21   : > { %272 = vst [vmem:[%s246_s24 + $0x8] sm:$0xf] (%p1848_p4), %v1323_v6  ;;  %274 = vst [vmem:[%s246_s24 + $0xc] sm:$0xf] (%p1848_p4), %v1324_v7 }
  0x23 PF: > { %p1325_p11 = scmp.ge.s32.totalorder %s1772_s20, 1  ;;  %p304_p12 = scmp.lt.s32.totalorder %s1772_s20, 3 }
  0x25   : > { %p305_p13 = pnand %p1325_p11, %p304_p12 }
  0x26   : > { %s1887_s25 = sand.u32 (!%p305_p13), 1, %s1756_s16   ;;  %v1774_v8 = vmov (!%p305_p13), 0   ;;  %s1775_s5 = smov (!%p305_p13), 127   ;;  %v1648_v13 = vld [vmem:[%s2237_s2 + $0x4] ss:$8 sps:$4 sm:$0xff] (!%p305_p13)   ;;  %vm825_vm0 = vcmask (!%p305_p13), 785408  }
  0x27   : > { %308 = sbr.rel (%p305_p13) target bundleno = 498 (0x1f2), region = 110  ;;  %s1326_s27 = sshll.u32 (!%p305_p13), %s1887_s25, 4  ;;  %874 = vmatprep.subr.bf16.mxu0 (!%p305_p13), %v1774_v8  ;;  %1548 = vmatprep.subr.bf16.mxu1 (!%p305_p13), %v1774_v8  ;;  %v1651_v14 = vld [vmem:[%s2237_s2 + $0x84] ss:$8 sps:$4 sm:$0xff] (!%p305_p13)   ;;  %v491_v17 = vld [vmem:[%s2238_s3 + $0x10] sm:$0xff] (!%p305_p13)  ;;  %v492_v18 = vld [vmem:[%s2238_s3 + $0x18] sm:$0xff] (!%p305_p13) }
  0x28   : > { %1641 = vset.pattern.permute.xlu1 (!%p305_p13), %v1774_v8  ;;  %1640 = vset.pattern.permute.xlu0 (!%p305_p13), %v1774_v8  ;;  %s313_s30 = scalar_lea.vmem (!%p305_p13), [#allocation2], %s1326_s27  ;;  %s320_s6 = scalar_lea.vmem (!%p305_p13), [#allocation3], %s1326_s27  ;;  %v490_v15 = vld [vmem:[%s2238_s3 + $0x8] sm:$0xff] (!%p305_p13)  ;;  %v489_v16 = vld [vmem:[%s2238_s3] sm:$0xff] (!%p305_p13)  ;;  %v495_v21 = vld [vmem:[%s2238_s3 + $0x30] sm:$0xff] (!%p305_p13)  ;;  %vm387_vm1 = vcmask (!%p305_p13), 1039360  }
  0x29   : > { %v1642_v9 = vld [vmem:[%s313_s30 + $0x8] sm:$0xff] (!%p305_p13)   ;;  %v1643_v10 = vld [vmem:[%s313_s30] sm:$0xff] (!%p305_p13)   ;;  %s1776_s7 = smov (!%p305_p13), 126   ;;  %s1777_s8 = smov (!%p305_p13), 125   ;;  %1365 = vmatprep.mubr.msk.bf16.mxu0 (!%p305_p13), %vm825_vm0, %v1648_v13  ;;  %1373 = vmatprep.mubr.msk.bf16.mxu1 (!%p305_p13), %vm825_vm0, %v1651_v14  ;;  %vm400_vm2 = vcmask (!%p305_p13), 1031168   ;;  %vm413_vm3 = vcmask (!%p305_p13), 1022976  }
  0x2a   : > { %383 = vrot.lane.b32.xlu1 (!%p305_p13), %v1642_v9, %s1775_s5  ;;  %v1644_v11 = vld [vmem:[%s320_s6 + $0x8] sm:$0xff] (!%p305_p13)   ;;  %379 = vrot.lane.b32.xlu0 (!%p305_p13), %v1643_v10, %s1775_s5  ;;  %v1645_v12 = vld [vmem:[%s320_s6] sm:$0xff] (!%p305_p13)   ;;  %s1778_s9 = smov (!%p305_p13), 124   ;;  %s1779_s10 = smov (!%p305_p13), 123   ;;  %vm426_vm4 = vcmask (!%p305_p13), 1014784   ;;  %vm439_vm5 = vcmask (!%p305_p13), 1006592  }
  0x2b   : > { %875 = vmatpush1.bf16.msra.mxu0 (!%p305_p13), %v1643_v10  ;;  %1562 = vmatpush1.bf16.msra.mxu1 (!%p305_p13), %v1643_v10  ;;  %s1780_s21 = smov (!%p305_p13), 122   ;;  %v493_v19 = vld [vmem:[%s2238_s3 + $0x20] sm:$0xff] (!%p305_p13)  ;;  %v494_v20 = vld [vmem:[%s2238_s3 + $0x28] sm:$0xff] (!%p305_p13)  ;;  %v496_v22 = vld [vmem:[%s2238_s3 + $0x38] sm:$0xff] (!%p305_p13)  ;;  %vm452_vm6 = vcmask (!%p305_p13), 998400   ;;  %s1781_s13 = smov (!%p305_p13), [#allocation4]  }
  0x2c   : > { %876 = vmatprep.subr.bf16.mxu0 (!%p305_p13), %v1774_v8  ;;  %1549 = vmatprep.subr.bf16.mxu1 (!%p305_p13), %v1774_v8  ;;  %v497_v23 = vld [vmem:[%s2238_s3 + $0x40] sm:$0xff] (!%p305_p13)  ;;  %v498_v24 = vld [vmem:[%s2238_s3 + $0x48] sm:$0xff] (!%p305_p13)  ;;  %v499_v25 = vld [vmem:[%s2238_s3 + $0x50] sm:$0xff] (!%p305_p13)  ;;  %s1698_s14 = sshll.u32 (!%p305_p13), %s1781_s13, 4  ;;  %s1699_s14 = int_to_ptr.vmem [resolvable:$false] %s1698_s14 }
  0x2d   : > { %v500_v26 = vld [vmem:[%s2238_s3 + $0x58] sm:$0xff] (!%p305_p13)  ;;  %v501_v27 = vld [vmem:[%s2238_s3 + $0x60] sm:$0xff] (!%p305_p13)  ;;  %v502_v28 = vld [vmem:[%s2238_s3 + $0x68] sm:$0xff] (!%p305_p13) }
  0x2e   : > { %385 = vrot.lane.b32.xlu1 %v1644_v11, %s1775_s5  ;;  %381 = vrot.lane.b32.xlu0 %v1645_v12, %s1775_s5  ;;  %v503_v29 = vld [vmem:[%s2238_s3 + $0x70] sm:$0xff]  ;;  %v504_v30 = vld [vmem:[%s2238_s3 + $0x78] sm:$0xff]  ;;  %s1328_s5 = sshll.u32 %s1887_s25, 7 }
  0x2f   : > { %877 = vmatpush1.bf16.msra.mxu0 %v1642_v9  ;;  %1563 = vmatpush1.bf16.msra.mxu1 %v1642_v9  ;;  %v505_v31 = vld [vmem:[%s2238_s3 + $0x80] sm:$0xff]  ;;  %v506_v32 = vld [vmem:[%s2238_s3 + $0x88] sm:$0xff]  ;;  %v507_v33 = vld [vmem:[%s2238_s3 + $0x90] sm:$0xff]  ;;  %s2151_s6 = scalar_lea.vmem [#allocation4], %s1328_s5 }
  0x30   : > { %878 = vmatprep.subr.bf16.mxu0 %v1774_v8  ;;  %1550 = vmatprep.subr.bf16.mxu1 %v1774_v8  ;;  %v508_v34 = vld [vmem:[%s2238_s3 + $0x98] sm:$0xff]  ;;  %v509_v35 = vld [vmem:[%s2238_s3 + $0xa0] sm:$0xff]  ;;  %v510_v36 = vld [vmem:[%s2238_s3 + $0xa8] sm:$0xff] }
  0x31   : > { %v511_v37 = vld [vmem:[%s2238_s3 + $0xb0] sm:$0xff]  ;;  %v512_v38 = vld [vmem:[%s2238_s3 + $0xb8] sm:$0xff]  ;;  %v513_v39 = vld [vmem:[%s2238_s3 + $0xc0] sm:$0xff] }
  0x32   : > { %394 = vrot.lane.b32.xlu1 %v1645_v12, %s1776_s7  ;;  %392 = vrot.lane.b32.xlu0 %v1643_v10, %s1776_s7  ;;  %v514_v40 = vld [vmem:[%s2238_s3 + $0xc8] sm:$0xff]  ;;  %v515_v41 = vld [vmem:[%s2238_s3 + $0xd0] sm:$0xff] }
  0x33   : > { %v516_v42 = vld [vmem:[%s2238_s3 + $0xd8] sm:$0xff]  ;;  %v517_v44 = vld [vmem:[%s2238_s3 + $0xe0] sm:$0xff]  ;;  %v518_v45 = vld [vmem:[%s2238_s3 + $0xe8] sm:$0xff] }
  0x34   : > { %v519_v50 = vld [vmem:[%s2238_s3 + $0xf0] sm:$0xff]  ;;  %v520_v51 = vld [vmem:[%s2238_s3 + $0xf8] sm:$0xff] }
  0x36   : > { %398 = vrot.lane.b32.xlu1 %v1644_v11, %s1776_s7  ;;  %396 = vrot.lane.b32.xlu0 %v1642_v9, %s1776_s7  ;;  %s1452_s7 = sshll.u32 %s1764_s18, 11  ;;  %s1196_s18 = scalar_lea.sflag [#allocation5], %s1887_s25 }
  0x37   : > { %s2182_s11 = scalar_lea.hbm %s2239_s4, %s1452_s7 }
  0x3a   : > { %407 = vrot.lane.b32.xlu1 %v1645_v12, %s1777_s8  ;;  %405 = vrot.lane.b32.xlu0 %v1643_v10, %s1777_s8 }
  0x3e   : > { %411 = vrot.lane.b32.xlu1 %v1644_v11, %s1777_s8  ;;  %409 = vrot.lane.b32.xlu0 %v1642_v9, %s1777_s8  ;;  %s1210_s8 = sshll.u32 %s2151_s6, 4  ;;  %s2184_s8 = int_to_ptr.vmem [resolvable:$true] %s1210_s8 }
  0x3f   : > { %s1694_s12 = scalar_lea.vmem %s2184_s8, 2048  ;;  %p1701_p3 = scmp.lt.s32.totalorder %s2184_s8, %s1699_s14 }
  0x40   : > { %p1695_p0 = scmp.ne.s32.totalorder %s2184_s8, %s1694_s12 }
  0x42   : > { %420 = vrot.lane.b32.xlu1 %v1645_v12, %s1778_s9  ;;  %418 = vrot.lane.b32.xlu0 %v1643_v10, %s1778_s9  ;;  %p1696_p1 = pnand %p1695_p0, %p1852_p5 }
  0x44   : > { %p1697_p2 = pneg %p1696_p1 }
  0x46   : > { %424 = vrot.lane.b32.xlu1 %v1644_v11, %s1778_s9  ;;  %422 = vrot.lane.b32.xlu0 %v1642_v9, %s1778_s9 }
  0x4a   : > { %433 = vrot.lane.b32.xlu1 %v1645_v12, %s1779_s10  ;;  %431 = vrot.lane.b32.xlu0 %v1643_v10, %s1779_s10 }
  0x4e   : > { %437 = vrot.lane.b32.xlu1 %v1644_v11, %s1779_s10  ;;  %435 = vrot.lane.b32.xlu0 %v1642_v9, %s1779_s10 }
  0x52   : > { %446 = vrot.lane.b32.xlu1 %v1645_v12, %s1780_s21  ;;  %444 = vrot.lane.b32.xlu0 %v1643_v10, %s1780_s21 }
  0x56   : > { %450 = vrot.lane.b32.xlu1 %v1644_v11, %s1780_s21  ;;  %448 = vrot.lane.b32.xlu0 %v1642_v9, %s1780_s21  ;;  %s1700_s21 = scalar_lea.vmem %s1699_s14, 4096 }
  0x57   : > { %p1702_p4 = scmp.lt.s32.totalorder %s1700_s21, %s1694_s12 }
  0x59   : > { %p1703_p6 = por %p1702_p4, %p1701_p3 }
  0x5a   : > { %528 = vperm.xlu1 %1641, %v490_v15   ;;  %523 = vperm.xlu0 %1640, %v489_v16  }
  0x5b   : > { %p1704_p7 = pnand %p1703_p6, %p1697_p2 }
  0x5e   : > { %533 = vperm.xlu1 %1641, %v491_v17   ;;  %538 = vperm.xlu0 %1640, %v492_v18  }
  0x62   : > { %543 = vperm.xlu1 %1641, %v493_v19   ;;  %548 = vperm.xlu0 %1640, %v494_v20   ;;  %v1646_v20 = vld [vmem:[%s2237_s2] ss:$8 sps:$4 sm:$0xff]  }
  0x66   : > { %553 = vperm.xlu1 %1641, %v495_v21   ;;  %558 = vperm.xlu0 %1640, %v496_v22   ;;  %v1649_v21 = vld [vmem:[%s2237_s2 + $0x80] ss:$8 sps:$4 sm:$0xff]   ;;  %v1652_v22 = vld [vmem:[%s2237_s2 + $0x14] ss:$8 sps:$4 sm:$0xff]  }
  0x6a   : > { %563 = vperm.xlu1 %1641, %v497_v23   ;;  %568 = vperm.xlu0 %1640, %v498_v24   ;;  %v1654_v23 = vld [vmem:[%s2237_s2 + $0x94] ss:$8 sps:$4 sm:$0xff]   ;;  %v1657_v24 = vld [vmem:[%s2237_s2 + $0x90] ss:$8 sps:$4 sm:$0xff]  }
  0x6e   : > { %573 = vperm.xlu1 %1641, %v499_v25   ;;  %578 = vperm.xlu0 %1640, %v500_v26   ;;  %v1658_v25 = vld [vmem:[%s2237_s2 + $0x24] ss:$8 sps:$4 sm:$0xff]  }
  0x6f   : > { %v1660_v26 = vld [vmem:[%s2237_s2 + $0xa4] ss:$8 sps:$4 sm:$0xff]  }
  0x72   : > { %583 = vperm.xlu1 %1641, %v501_v27   ;;  %588 = vperm.xlu0 %1640, %v502_v28   ;;  %v1662_v27 = vld [vmem:[%s2237_s2 + $0x20] ss:$8 sps:$4 sm:$0xff]  }
  0x73   : > { %v1663_v28 = vld [vmem:[%s2237_s2 + $0xa0] ss:$8 sps:$4 sm:$0xff]  }
  0x76   : > { %593 = vperm.xlu1 %1641, %v503_v29   ;;  %598 = vperm.xlu0 %1640, %v504_v30   ;;  %v1664_v29 = vld [vmem:[%s2237_s2 + $0x34] ss:$8 sps:$4 sm:$0xff]  }
  0x77   : > { %v1666_v30 = vld [vmem:[%s2237_s2 + $0xb4] ss:$8 sps:$4 sm:$0xff]  }
  0x7a   : > { %603 = vperm.xlu1 %1641, %v505_v31   ;;  %608 = vperm.xlu0 %1640, %v506_v32   ;;  %v1668_v31 = vld [vmem:[%s2237_s2 + $0x30] ss:$8 sps:$4 sm:$0xff]  }
  0x7b   : > { %v1669_v32 = vld [vmem:[%s2237_s2 + $0xb0] ss:$8 sps:$4 sm:$0xff]  }
  0x7e   : > { %613 = vperm.xlu1 %1641, %v507_v33   ;;  %618 = vperm.xlu0 %1640, %v508_v34   ;;  %v1670_v33 = vld [vmem:[%s2237_s2 + $0x44] ss:$8 sps:$4 sm:$0xff]  }
  0x7f   : > { %v1672_v34 = vld [vmem:[%s2237_s2 + $0xc4] ss:$8 sps:$4 sm:$0xff]  }
  0x82   : > { %623 = vperm.xlu1 %1641, %v509_v35   ;;  %628 = vperm.xlu0 %1640, %v510_v36   ;;  %v1674_v35 = vld [vmem:[%s2237_s2 + $0x40] ss:$8 sps:$4 sm:$0xff]  }
  0x83   : > { %v1675_v36 = vld [vmem:[%s2237_s2 + $0xc0] ss:$8 sps:$4 sm:$0xff]  }
  0x86   : > { %633 = vperm.xlu1 %1641, %v511_v37   ;;  %638 = vperm.xlu0 %1640, %v512_v38   ;;  %v1676_v37 = vld [vmem:[%s2237_s2 + $0x54] ss:$8 sps:$4 sm:$0xff]  }
  0x87   : > { %v1678_v38 = vld [vmem:[%s2237_s2 + $0xd4] ss:$8 sps:$4 sm:$0xff]  }
  0x8a   : > { %643 = vperm.xlu1 %1641, %v513_v39   ;;  %648 = vperm.xlu0 %1640, %v514_v40   ;;  %v1680_v39 = vld [vmem:[%s2237_s2 + $0x50] ss:$8 sps:$4 sm:$0xff]  }
  0x8b   : > { %v1681_v40 = vld [vmem:[%s2237_s2 + $0xd0] ss:$8 sps:$4 sm:$0xff]  }
  0x8e   : > { %653 = vperm.xlu1 %1641, %v515_v41   ;;  %658 = vperm.xlu0 %1640, %v516_v42   ;;  %v1682_v41 = vld [vmem:[%s2237_s2 + $0x64] ss:$8 sps:$4 sm:$0xff]  }
  0x8f   : > { %v1684_v42 = vld [vmem:[%s2237_s2 + $0xe4] ss:$8 sps:$4 sm:$0xff]  }
  0x92   : > { %663 = vperm.xlu1 %1641, %v517_v44   ;;  %668 = vperm.xlu0 %1640, %v518_v45   ;;  %v1687_v44 = vld [vmem:[%s2237_s2 + $0xe0] ss:$8 sps:$4 sm:$0xff]   ;;  %v1688_v45 = vld [vmem:[%s2237_s2 + $0x74] ss:$8 sps:$4 sm:$0xff]  }
  0x96   : > { %673 = vperm.xlu1 %1641, %v519_v50   ;;  %678 = vperm.xlu0 %1640, %v520_v51  }
  0x9c   : > { %v384_v43 = vpop.permute.xlu1 %383  ;;  %v380_v46 = vpop.permute.xlu0 %379 }
  0xa0   : > { %v386_v47 = vpop.permute.xlu1 %385  ;;  %v382_v48 = vpop.permute.xlu0 %381 }
  0xa1   : > { %v388_v49 = vsel %vm387_vm1, %v380_v46, %v382_v48  ;;  %v389_v54 = vsel %vm387_vm1, %v384_v43, %v386_v47  ;;  %v1686_v43 = vld [vmem:[%s2237_s2 + $0x60] ss:$8 sps:$4 sm:$0xff]   ;;  %v1690_v46 = vld [vmem:[%s2237_s2 + $0xf4] ss:$8 sps:$4 sm:$0xff]   ;;  %v1692_v47 = vld [vmem:[%s2237_s2 + $0x70] ss:$8 sps:$4 sm:$0xff]  }
  0xa2   : > { %879 = vmatpush1.bf16.msra.mxu0 %v388_v49  ;;  %1564 = vmatpush1.bf16.msra.mxu1 %v388_v49  ;;  %v1693_v48 = vld [vmem:[%s2237_s2 + $0xf0] ss:$8 sps:$4 sm:$0xff]  }
  0xa3   : > { %880 = vmatprep.subr.bf16.mxu0 %v1774_v8  ;;  %1551 = vmatprep.subr.bf16.mxu1 %v1774_v8 }
  0xa4   : > { %v395_v52 = vpop.permute.xlu1 %394  ;;  %v393_v53 = vpop.permute.xlu0 %392 }
  0xa5   : > { %v401_v55 = vsel %vm400_vm2, %v393_v53, %v395_v52 }
  0xa6   : > { %881 = vmatpush1.bf16.msra.mxu0 %v389_v54  ;;  %1565 = vmatpush1.bf16.msra.mxu1 %v389_v54 }
  0xa7   : > { %882 = vmatprep.subr.bf16.mxu0 %v1774_v8  ;;  %1552 = vmatprep.subr.bf16.mxu1 %v1774_v8 }
  0xa8   : > { %v399_v56 = vpop.permute.xlu1 %398  ;;  %v397_v57 = vpop.permute.xlu0 %396 }
  0xa9   : > { %v402_v58 = vsel %vm400_vm2, %v397_v57, %v399_v56 }
  0xaa   : > { %883 = vmatpush1.bf16.msra.mxu0 %v401_v55  ;;  %1566 = vmatpush1.bf16.msra.mxu1 %v401_v55 }
  0xab   : > { %884 = vmatprep.subr.bf16.mxu0 %v1774_v8  ;;  %1553 = vmatprep.subr.bf16.mxu1 %v1774_v8 }
  0xac   : > { %v408_v59 = vpop.permute.xlu1 %407  ;;  %v406_v60 = vpop.permute.xlu0 %405 }
  0xad   : > { %v414_v61 = vsel %vm413_vm3, %v406_v60, %v408_v59 }
  0xae   : > { %885 = vmatpush1.bf16.msra.mxu0 %v402_v58  ;;  %1567 = vmatpush1.bf16.msra.mxu1 %v402_v58 }
  0xaf   : > { %886 = vmatprep.subr.bf16.mxu0 %v1774_v8  ;;  %1554 = vmatprep.subr.bf16.mxu1 %v1774_v8 }
  0xb0   : > { %v412_v62 = vpop.permute.xlu1 %411  ;;  %v410_v63 = vpop.permute.xlu0 %409 }
  0xb1   : > { %v415_v0 = vsel %vm413_vm3, %v410_v63, %v412_v62 }
  0xb2   : > { %887 = vmatpush1.bf16.msra.mxu0 %v414_v61  ;;  %1568 = vmatpush1.bf16.msra.mxu1 %v414_v61 }
  0xb3   : > { %888 = vmatprep.subr.bf16.mxu0 %v1774_v8  ;;  %1555 = vmatprep.subr.bf16.mxu1 %v1774_v8 }
  0xb4   : > { %v421_v1 = vpop.permute.xlu1 %420  ;;  %v419_v2 = vpop.permute.xlu0 %418 }
  0xb5   : > { %v427_v3 = vsel %vm426_vm4, %v419_v2, %v421_v1 }
  0xb6   : > { %889 = vmatpush1.bf16.msra.mxu0 %v415_v0  ;;  %1569 = vmatpush1.bf16.msra.mxu1 %v415_v0 }
  0xb7   : > { %890 = vmatprep.subr.bf16.mxu0 %v1774_v8  ;;  %1556 = vmatprep.subr.bf16.mxu1 %v1774_v8 }
  0xb8   : > { %v425_v4 = vpop.permute.xlu1 %424  ;;  %v423_v5 = vpop.permute.xlu0 %422 }
  0xb9   : > { %v428_v6 = vsel %vm426_vm4, %v423_v5, %v425_v4 }
  0xba   : > { %891 = vmatpush1.bf16.msra.mxu0 %v427_v3  ;;  %1570 = vmatpush1.bf16.msra.mxu1 %v427_v3 }
  0xbb   : > { %892 = vmatprep.subr.bf16.mxu0 %v1774_v8  ;;  %1557 = vmatprep.subr.bf16.mxu1 %v1774_v8 }
  0xbc   : > { %v434_v7 = vpop.permute.xlu1 %433  ;;  %v432_v9 = vpop.permute.xlu0 %431 }
  0xbd   : > { %v440_v10 = vsel %vm439_vm5, %v432_v9, %v434_v7 }
  0xbe   : > { %893 = vmatpush1.bf16.msra.mxu0 %v428_v6  ;;  %1571 = vmatpush1.bf16.msra.mxu1 %v428_v6 }
  0xbf   : > { %894 = vmatprep.subr.bf16.mxu0 %v1774_v8  ;;  %1558 = vmatprep.subr.bf16.mxu1 %v1774_v8 }
  0xc0   : > { %v438_v11 = vpop.permute.xlu1 %437  ;;  %v436_v12 = vpop.permute.xlu0 %435 }
  0xc1   : > { %v441_v13 = vsel %vm439_vm5, %v436_v12, %v438_v11 }
  0xc2   : > { %895 = vmatpush1.bf16.msra.mxu0 %v440_v10  ;;  %1572 = vmatpush1.bf16.msra.mxu1 %v440_v10 }
  0xc3   : > { %896 = vmatprep.subr.bf16.mxu0 %v1774_v8  ;;  %1559 = vmatprep.subr.bf16.mxu1 %v1774_v8 }
  0xc4   : > { %v447_v14 = vpop.permute.xlu1 %446  ;;  %v445_v15 = vpop.permute.xlu0 %444 }
  0xc5   : > { %v453_v16 = vsel %vm452_vm6, %v445_v15, %v447_v14 }
  0xc6   : > { %897 = vmatpush1.bf16.msra.mxu0 %v441_v13  ;;  %1573 = vmatpush1.bf16.msra.mxu1 %v441_v13 }
  0xc7   : > { %898 = vmatprep.subr.bf16.mxu0 %v1774_v8  ;;  %1560 = vmatprep.subr.bf16.mxu1 %v1774_v8 }
  0xc8   : > { %v451_v17 = vpop.permute.xlu1 %450  ;;  %v449_v18 = vpop.permute.xlu0 %448 }
  0xc9   : > { %v454_v19 = vsel %vm452_vm6, %v449_v18, %v451_v17 }
  0xca   : > { %899 = vmatpush1.bf16.msra.mxu0 %v453_v16  ;;  %1574 = vmatpush1.bf16.msra.mxu1 %v453_v16 }
  0xcb   : > { %900 = vmatprep.subr.bf16.mxu0 %v1774_v8  ;;  %1561 = vmatprep.subr.bf16.mxu1 %v1774_v8  ;;  %v1656_v8 = vld [vmem:[%s2237_s2 + $0x10] ss:$8 sps:$4 sm:$0xff]  }
  0xce   : > { %901 = vmatpush1.bf16.msra.mxu0 %v454_v19  ;;  %1575 = vmatpush1.bf16.msra.mxu1 %v454_v19 }
  0xd1   : > { %907 = vmatmul.mubr.bf16.vlgmr.msra.gmra.mrb[0].mxu0 %v1646_v20  ;;  %971 = vmatmul.mubr.bf16.vlgmr.msra.gmra.mrb[0].mxu1 %v1649_v21 }
  0xd2   : > { %1366 = vmatprep.mubr.msk.bf16.mxu0 %vm825_vm0, %v1652_v22  ;;  %1374 = vmatprep.mubr.msk.bf16.mxu1 %vm825_vm0, %v1654_v23 }
  0xd9   : > { %915 = vmatmul.mubr.bf16.gmra.mrb[4].mxu0 %v1656_v8  ;;  %979 = vmatmul.mubr.bf16.gmra.mrb[4].mxu1 %v1657_v24  ;;  %v529_v49 = vpop.permute.xlu1 %528  ;;  %v524_v50 = vpop.permute.xlu0 %523 }
  0xda   : > { %1367 = vmatprep.mubr.msk.bf16.mxu0 %vm825_vm0, %v1658_v25  ;;  %1375 = vmatprep.mubr.msk.bf16.mxu1 %vm825_vm0, %v1660_v26 }
  0xdd   : > { %v534_v51 = vpop.permute.xlu1 %533  ;;  %v539_v52 = vpop.permute.xlu0 %538 }
  0xe1   : > { %923 = vmatmul.mubr.bf16.gmra.mrb[8].mxu0 %v1662_v27  ;;  %987 = vmatmul.mubr.bf16.gmra.mrb[8].mxu1 %v1663_v28  ;;  %v544_v53 = vpop.permute.xlu1 %543  ;;  %v549_v54 = vpop.permute.xlu0 %548 }
  0xe2   : > { %1368 = vmatprep.mubr.msk.bf16.mxu0 %vm825_vm0, %v1664_v29  ;;  %1376 = vmatprep.mubr.msk.bf16.mxu1 %vm825_vm0, %v1666_v30 }
  0xe5   : > { %v2130_v55 = vpop.permute.xlu1 %553  ;;  %v2132_v56 = vpop.permute.xlu0 %558 }
  0xe9   : > { %931 = vmatmul.mubr.bf16.gmra.mrb[12].mxu0 %v1668_v31  ;;  %995 = vmatmul.mubr.bf16.gmra.mrb[12].mxu1 %v1669_v32  ;;  %v2134_v57 = vpop.permute.xlu1 %563  ;;  %v2136_v58 = vpop.permute.xlu0 %568 }
  0xea   : > { %1369 = vmatprep.mubr.msk.bf16.mxu0 %vm825_vm0, %v1670_v33  ;;  %1377 = vmatprep.mubr.msk.bf16.mxu1 %vm825_vm0, %v1672_v34 }
  0xed   : > { %v2138_v59 = vpop.permute.xlu1 %573  ;;  %v2140_v60 = vpop.permute.xlu0 %578 }
  0xf1   : > { %939 = vmatmul.mubr.bf16.gmra.mrb[16].mxu0 %v1674_v35  ;;  %1003 = vmatmul.mubr.bf16.gmra.mrb[16].mxu1 %v1675_v36  ;;  %v2142_v61 = vpop.permute.xlu1 %583  ;;  %v2144_v62 = vpop.permute.xlu0 %588 }
  0xf2   : > { %1370 = vmatprep.mubr.msk.bf16.mxu0 %vm825_vm0, %v1676_v37  ;;  %1378 = vmatprep.mubr.msk.bf16.mxu1 %vm825_vm0, %v1678_v38 }
  0xf5   : > { %v2146_v63 = vpop.permute.xlu1 %593  ;;  %v2148_v0 = vpop.permute.xlu0 %598 }
  0xf9   : > { %947 = vmatmul.mubr.bf16.gmra.mrb[20].mxu0 %v1680_v39  ;;  %1011 = vmatmul.mubr.bf16.gmra.mrb[20].mxu1 %v1681_v40  ;;  %v604_v1 = vpop.permute.xlu1 %603  ;;  %v609_v2 = vpop.permute.xlu0 %608 }
  0xfa   : > { %1371 = vmatprep.mubr.msk.bf16.mxu0 %vm825_vm0, %v1682_v41  ;;  %1379 = vmatprep.mubr.msk.bf16.mxu1 %vm825_vm0, %v1684_v42 }
  0xfd   : > { %v614_v18 = vpop.permute.xlu1 %613  ;;  %v619_v19 = vpop.permute.xlu0 %618 }
 0x101   : > { %955 = vmatmul.mubr.bf16.gmra.mrb[24].mxu0 %v1686_v43  ;;  %1019 = vmatmul.mubr.bf16.gmra.mrb[24].mxu1 %v1687_v44  ;;  %v624_v33 = vpop.permute.xlu1 %623  ;;  %v629_v34 = vpop.permute.xlu0 %628 }
 0x102   : > { %1372 = vmatprep.mubr.msk.bf16.mxu0 %vm825_vm0, %v1688_v45  ;;  %1380 = vmatprep.mubr.msk.bf16.mxu1 %vm825_vm0, %v1690_v46 }
 0x109   : > { %963 = vmatmul.mubr.bf16.gmra.mrb[28].mxu0 %v1692_v47  ;;  %1027 = vmatmul.mubr.bf16.gmra.mrb[28].mxu1 %v1693_v48 }
 0x1a4   : > { %v908_v3 = vpop.f32.mrb[0].mxu0  ;;  %v972_v4 = vpop.f32.mrb[0].mxu1 }
 0x1a5   : > { %v910_v5 = vpop.f32.mrb[1].mxu0  ;;  %v974_v6 = vpop.f32.mrb[1].mxu1  ;;  %v909_v10 = vadd.f32 %v908_v3, %v524_v50  ;;  %v973_v11 = vadd.f32 %v972_v4, %v604_v1 }
 0x1a6   : > { %v911_v7 = vpop.f32.mrb[2].mxu0  ;;  %v975_v9 = vpop.f32.mrb[2].mxu1 }
 0x1a7   : > { %v912_v12 = vadd.f32 %v911_v7, %v529_v49  ;;  %v976_v13 = vadd.f32 %v975_v9, %v609_v2  ;;  %v913_v14 = vpop.f32.mrb[3].mxu0  ;;  %v977_v15 = vpop.f32.mrb[3].mxu1 }
 0x1a8   : > { %v634_v49 = vpop.permute.xlu1 %633  ;;  %v639_v50 = vpop.permute.xlu0 %638 }
 0x1a9   : > { %v1456_v16 = vpack.c.bf16 %v912_v12, %v909_v10  ;;  %v1496_v17 = vpack.c.bf16 %v976_v13, %v973_v11 }
 0x1ab   : > { %1457 = vst [vmem:[%s2151_s6] sm:$0xff] %v1456_v16   ;;  %1540 = vst [vmem:[%s2151_s6 + $0x40] sm:$0xff] %v1496_v17  }
 0x1ac   : > { %v916_v20 = vpop.f32.mrb[4].mxu0  ;;  %v980_v21 = vpop.f32.mrb[4].mxu1 }
 0x1ad   : > { %v918_v22 = vpop.f32.mrb[5].mxu0  ;;  %v982_v23 = vpop.f32.mrb[5].mxu1  ;;  %v917_v25 = vadd.f32 %v916_v20, %v534_v51  ;;  %v981_v26 = vadd.f32 %v980_v21, %v614_v18 }
 0x1ae   : > { %v919_v8 = vpop.f32.mrb[6].mxu0  ;;  %v983_v24 = vpop.f32.mrb[6].mxu1 }
 0x1af   : > { %v920_v27 = vadd.f32 %v919_v8, %v539_v52  ;;  %v984_v28 = vadd.f32 %v983_v24, %v619_v19  ;;  %v921_v29 = vpop.f32.mrb[7].mxu0  ;;  %v985_v30 = vpop.f32.mrb[7].mxu1 }
 0x1b0   : > { %v644_v12 = vpop.permute.xlu1 %643  ;;  %v649_v13 = vpop.permute.xlu0 %648 }
 0x1b1   : > { %v1461_v31 = vpack.c.bf16 %v920_v27, %v917_v25  ;;  %v1501_v32 = vpack.c.bf16 %v984_v28, %v981_v26 }
 0x1b3   : > { %1533 = vst [vmem:[%s2151_s6 + $0x8] sm:$0xff] %v1461_v31   ;;  %1541 = vst [vmem:[%s2151_s6 + $0x48] sm:$0xff] %v1501_v32  }
 0x1b4   : > { %v924_v35 = vpop.f32.mrb[8].mxu0  ;;  %v988_v36 = vpop.f32.mrb[8].mxu1 }
 0x1b5   : > { %v926_v37 = vpop.f32.mrb[9].mxu0  ;;  %v990_v38 = vpop.f32.mrb[9].mxu1  ;;  %v925_v41 = vadd.f32 %v924_v35, %v544_v53  ;;  %v989_v42 = vadd.f32 %v988_v36, %v624_v33 }
 0x1b6   : > { %v927_v39 = vpop.f32.mrb[10].mxu0  ;;  %v991_v40 = vpop.f32.mrb[10].mxu1 }
 0x1b7   : > { %v928_v43 = vadd.f32 %v927_v39, %v549_v54  ;;  %v992_v44 = vadd.f32 %v991_v40, %v629_v34  ;;  %v929_v45 = vpop.f32.mrb[11].mxu0  ;;  %v993_v46 = vpop.f32.mrb[11].mxu1 }
 0x1b8   : > { %v654_v25 = vpop.permute.xlu1 %653  ;;  %v659_v26 = vpop.permute.xlu0 %658 }
 0x1b9   : > { %v1466_v47 = vpack.c.bf16 %v928_v43, %v925_v41  ;;  %v1506_v48 = vpack.c.bf16 %v992_v44, %v989_v42 }
 0x1bb   : > { %1534 = vst [vmem:[%s2151_s6 + $0x10] sm:$0xff] %v1466_v47   ;;  %1542 = vst [vmem:[%s2151_s6 + $0x50] sm:$0xff] %v1506_v48  }
 0x1bc   : > { %v932_v51 = vpop.f32.mrb[12].mxu0  ;;  %v996_v52 = vpop.f32.mrb[12].mxu1 }
 0x1bd   : > { %v934_v1 = vpop.f32.mrb[13].mxu0  ;;  %v998_v2 = vpop.f32.mrb[13].mxu1  ;;  %v933_v53 = vadd.f32 %v932_v51, %v2130_v55  ;;  %v997_v54 = vadd.f32 %v996_v52, %v634_v49 }
 0x1be   : > { %v935_v3 = vpop.f32.mrb[14].mxu0  ;;  %v999_v4 = vpop.f32.mrb[14].mxu1 }
 0x1bf   : > { %v936_v5 = vadd.f32 %v935_v3, %v2132_v56  ;;  %v1000_v6 = vadd.f32 %v999_v4, %v639_v50  ;;  %v937_v7 = vpop.f32.mrb[15].mxu0  ;;  %v1001_v9 = vpop.f32.mrb[15].mxu1 }
 0x1c0   : > { %v664_v39 = vpop.permute.xlu1 %663  ;;  %v669_v40 = vpop.permute.xlu0 %668 }
 0x1c1   : > { %v1471_v10 = vpack.c.bf16 %v936_v5, %v933_v53  ;;  %v1511_v11 = vpack.c.bf16 %v1000_v6, %v997_v54 }
 0x1c3   : > { %1535 = vst [vmem:[%s2151_s6 + $0x18] sm:$0xff] %v1471_v10   ;;  %1543 = vst [vmem:[%s2151_s6 + $0x58] sm:$0xff] %v1511_v11  }
 0x1c4   : > { %v940_v14 = vpop.f32.mrb[16].mxu0  ;;  %v1004_v15 = vpop.f32.mrb[16].mxu1 }
 0x1c5   : > { %v942_v16 = vpop.f32.mrb[17].mxu0  ;;  %v1006_v17 = vpop.f32.mrb[17].mxu1  ;;  %v941_v19 = vadd.f32 %v940_v14, %v2134_v57  ;;  %v1005_v56 = vadd.f32 %v1004_v15, %v644_v12 }
 0x1c6   : > { %v943_v18 = vpop.f32.mrb[18].mxu0  ;;  %v1007_v55 = vpop.f32.mrb[18].mxu1 }
 0x1c7   : > { %v944_v20 = vadd.f32 %v943_v18, %v2136_v58  ;;  %v1008_v21 = vadd.f32 %v1007_v55, %v649_v13  ;;  %v945_v22 = vpop.f32.mrb[19].mxu0  ;;  %v1009_v23 = vpop.f32.mrb[19].mxu1 }
 0x1c8   : > { %v674_v1 = vpop.permute.xlu1 %673  ;;  %v679_v2 = vpop.permute.xlu0 %678 }
 0x1c9   : > { %v1476_v8 = vpack.c.bf16 %v944_v20, %v941_v19  ;;  %v1516_v24 = vpack.c.bf16 %v1008_v21, %v1005_v56 }
 0x1cb   : > { %1536 = vst [vmem:[%s2151_s6 + $0x20] sm:$0xff] %v1476_v8   ;;  %1544 = vst [vmem:[%s2151_s6 + $0x60] sm:$0xff] %v1516_v24  }
 0x1cc   : > { %v948_v27 = vpop.f32.mrb[20].mxu0  ;;  %v1012_v28 = vpop.f32.mrb[20].mxu1 }
 0x1cd   : > { %v950_v29 = vpop.f32.mrb[21].mxu0  ;;  %v1014_v30 = vpop.f32.mrb[21].mxu1  ;;  %v949_v32 = vadd.f32 %v948_v27, %v2138_v59  ;;  %v1013_v58 = vadd.f32 %v1012_v28, %v654_v25 }
 0x1ce   : > { %v951_v31 = vpop.f32.mrb[22].mxu0  ;;  %v1015_v57 = vpop.f32.mrb[22].mxu1 }
 0x1cf   : > { %v952_v33 = vadd.f32 %v951_v31, %v2140_v60  ;;  %v1016_v34 = vadd.f32 %v1015_v57, %v659_v26  ;;  %v953_v35 = vpop.f32.mrb[23].mxu0  ;;  %v1017_v36 = vpop.f32.mrb[23].mxu1 }
 0x1d1   : > { %v1481_v37 = vpack.c.bf16 %v952_v33, %v949_v32  ;;  %v1521_v38 = vpack.c.bf16 %v1016_v34, %v1013_v58 }
 0x1d3   : > { %1537 = vst [vmem:[%s2151_s6 + $0x28] sm:$0xff] %v1481_v37   ;;  %1545 = vst [vmem:[%s2151_s6 + $0x68] sm:$0xff] %v1521_v38  }
 0x1d4   : > { %v956_v41 = vpop.f32.mrb[24].mxu0  ;;  %v1020_v42 = vpop.f32.mrb[24].mxu1 }
 0x1d5   : > { %v958_v43 = vpop.f32.mrb[25].mxu0  ;;  %v1022_v44 = vpop.f32.mrb[25].mxu1  ;;  %v957_v46 = vadd.f32 %v956_v41, %v2142_v61  ;;  %v1021_v60 = vadd.f32 %v1020_v42, %v664_v39 }
 0x1d6   : > { %v959_v45 = vpop.f32.mrb[26].mxu0  ;;  %v1023_v59 = vpop.f32.mrb[26].mxu1 }
 0x1d7   : > { %v960_v47 = vadd.f32 %v959_v45, %v2144_v62  ;;  %v1024_v48 = vadd.f32 %v1023_v59, %v669_v40  ;;  %v961_v49 = vpop.f32.mrb[27].mxu0  ;;  %v1025_v50 = vpop.f32.mrb[27].mxu1 }
 0x1d9   : > { %v1486_v51 = vpack.c.bf16 %v960_v47, %v957_v46  ;;  %v1526_v52 = vpack.c.bf16 %v1024_v48, %v1021_v60 }
 0x1db   : > { %1538 = vst [vmem:[%s2151_s6 + $0x30] sm:$0xff] %v1486_v51   ;;  %1546 = vst [vmem:[%s2151_s6 + $0x70] sm:$0xff] %v1526_v52  }
 0x1dc   : > { %v964_v3 = vpop.f32.mrb[28].mxu0  ;;  %v1028_v4 = vpop.f32.mrb[28].mxu1 }
 0x1dd   : > { %v966_v53 = vpop.f32.mrb[29].mxu0  ;;  %v1030_v54 = vpop.f32.mrb[29].mxu1  ;;  %v965_v5 = vadd.f32 %v964_v3, %v2146_v63  ;;  %v1029_v6 = vadd.f32 %v1028_v4, %v674_v1 }
 0x1de   : > { %v967_v61 = vpop.f32.mrb[30].mxu0  ;;  %v1031_v62 = vpop.f32.mrb[30].mxu1 }
 0x1df   : > { %v968_v7 = vadd.f32 %v967_v61, %v2148_v0  ;;  %v1032_v9 = vadd.f32 %v1031_v62, %v679_v2  ;;  %v969_v10 = vpop.f32.mrb[31].mxu0  ;;  %v1033_v11 = vpop.f32.mrb[31].mxu1 }
 0x1e1   : > { %v1491_v12 = vpack.c.bf16 %v968_v7, %v965_v5  ;;  %v1531_v13 = vpack.c.bf16 %v1032_v9, %v1029_v6 }
 0x1e3   : > { %1539 = vst [vmem:[%s2151_s6 + $0x38] sm:$0xff] %v1491_v12   ;;  %1547 = vst [vmem:[%s2151_s6 + $0x78] sm:$0xff] %v1531_v13  }
 0x1e4   : > { %1707 = shalt.err (!%p1704_p7)
}
 0x1e5   : > { %s1708_s22 = scalar_lea.hbm %s2182_s11, 2048  ;;  %s1712_s30 = scalar_lea.hbm %s2239_s4, 4096 }
 0x1e6   : > { %p1709_p8 = scmp.ne.s32.totalorder %s2182_s11, %s1708_s22  ;;  %p1713_p13 = scmp.lt.u32.totalorder %s2182_s11, %s2239_s4 }
 0x1e7   : > { %p1714_p0 = scmp.lt.u32.totalorder %s1712_s30, %s1708_s22  ;;  %p1716_p2 = scmp.lt.u32.totalorder %s1708_s22, %s2182_s11 }
 0x1e8   : > { %p1710_p11 = pnand %p1709_p8, %p1852_p5 }
 0x1e9   : > { %p1715_p1 = por %p1714_p0, %p1713_p13 }
 0x1ea   : > { %p1711_p12 = pneg %p1710_p11 }
 0x1eb   : > { %p1717_p3 = por %p1716_p2, %p1715_p1 }
 0x1ed   : > { %p1718_p4 = pnand %p1717_p3, %p1711_p12 }
 0x1ef   : > { %1721 = shalt.err (!%p1718_p4)
}
 0x1f0   : > { %s1782_s7 = smov 64   ;;  %s1783_s9 = smov 4  }
 0x1f1   : > { %1576 = dma.vmem_to_hbm [thread:$0]  (%p1852_p5), %s2184_s8, 2048, %s2182_s11, %s1196_s18, %s1782_s7, %s1782_s7, %s1783_s9  }
 0x1f2 PF: > { %s1225_s10 = sand.u32 1, %s1752_s15   ;;  %p1579_p6 = pnand %p1314_p10, %p1863_p9 }
 0x1f3   : > { %s1226_s12 = scalar_lea.sflag [#allocation5], %s1225_s10 }
 0x1f4   : > { %1747 = dma.done.wait (!%p1579_p6), %s1226_s12, 2048  }
 0x1f5   : > { %1749 = vsyncadd (!%p1579_p6), %s1226_s12, 4294965248  ;;  %s17_s20 = sadd.s32 1, %s1772_s20   ;;  %s2243_s15 = smov %s1756_s16 }
 0x1f6   : > { %p14_p7 = scmp.ge.s32.totalorder %s17_s20, 4   ;;  %s2244_s16 = smov %s1760_s17 }
 0x1f7   : > { %s2245_s17 = smov %s1861_s28  ;;  %s2246_s18 = smov %s1768_s19 }
 0x1f8   : > { %s2247_s19 = smov %s2249_s23  ;;  %16 = sbr.rel (!%p14_p7) target bundleno = 4 (0x4), region = 166 }
 0x1ff   :  { %1231 = vsyncpa [#allocation5], 1 }
 0x200   :  { %1233 = vsyncpa [#allocation5 + $0x1], 1 }

</bundles_post_ra>
